<compile_context>
chip_gen: v7x
topology: tpu7x:2x2x1
jax: 0.10.0
libtpu: 0.0.40
codegen_flags: <defaults>
</compile_context>

<pallas_src>
import jax
import jax.numpy as jnp
from jax import lax
from jax.experimental import pallas as pl
from jax.experimental.pallas import tpu as pltpu


def _round_up(x, m):
    return ((x + m - 1) // m) * m


def patch_embed_kernel(patches_ref, w_ref, pos_ref, cls_ref, out_ref):
    # patches_ref: (bb, Nk, Kp)  zero-padded patch matrix (compute dtype)
    # w_ref:       (Kp, Ep)      conv weight as (K, E) matrix, zero-padded
    # pos_ref:     (Nk, Ep)      positions[1:] + conv bias (f32), zero-padded
    # cls_ref:     (1, Ep)       cls_token + positions[0] (f32), zero-padded
    # out_ref:     (bb, N+1, E)  final embedding rows for this batch group
    bb, nk, kp = patches_ref.shape
    ep = w_ref.shape[1]
    n = out_ref.shape[1] - 1
    e = out_ref.shape[2]

    # Fold the batch group into M for one tall MXU matmul.  Nk is a multiple
    # of 8, so this reshape is sublane-aligned (no hidden VMEM relayout).
    lhs = patches_ref[...].reshape(bb * nk, kp)
    proj = jnp.dot(lhs, w_ref[...], preferred_element_type=jnp.float32)
    body = proj.reshape(bb, nk, ep) + pos_ref[...]            # f32 VPU add

    cls_rows = jnp.broadcast_to(cls_ref[...].reshape(1, 1, ep), (bb, 1, ep))

    # Row 0: cls_token + positions[0]; rows 1..N: projection + bias + pos.
    # The sublane-offset store is VMEM-side and far cheaper than the two HBM
    # round-trips a wrapper-side slice+concat epilogue would cost.
    out_ref[:, pl.ds(0, 1), :] = cls_rows[:, :, :e].astype(out_ref.dtype)
    out_ref[:, pl.ds(1, n), :] = body[:, :n, :e].astype(out_ref.dtype)


def patch_embedding(x, conv_w, conv_b, cls_token, positions, patch_size, *,
                    compute_dtype=jnp.bfloat16, out_dtype=jnp.float32,
                    block_batch=None):
    """x: (B, C, H, W). Returns (B, N+1, E), matching the PyTorch forward.

    compute_dtype: matmul-operand dtype (bf16 default; accumulation is f32).
    out_dtype: output dtype (pass jnp.bfloat16 if downstream accepts it to
    halve the largest HBM write stream).
    """
    B, C, H, W = x.shape
    E = conv_w.shape[0]
    p = patch_size
    Hp, Wp = H // p, W // p
    N = Hp * Wp
    K = C * p * p

    Nk = _round_up(N, 8)      # sublane-aligned patch-row count
    Kp = _round_up(K, 128)    # lane-dense contraction dim (real ViT: K=768, no pad)
    Ep = _round_up(E, 128)    # lane-dense embedding dim for in-kernel compute

    # --- patchify (XLA): downcast FIRST so the materialized transpose moves
    # half the bytes, then NCHW -> (B, N, K), K flattened as (c, ph, pw) to
    # match the conv-weight flattening.
    # TODO(synk): fold patch extraction into the kernel (memory_space=pl.ANY +
    # manual strided DMAs) to remove this remaining HBM round trip of the
    # activations entirely.
    xc = x.astype(compute_dtype)
    patches = xc.reshape(B, C, Hp, p, Wp, p).transpose(0, 2, 4, 1, 3, 5)
    patches = patches.reshape(B, N, K)
    if (Nk, Kp) != (N, K):
        patches = jnp.pad(patches, ((0, 0), (0, Nk - N), (0, Kp - K)))

    # conv weight -> (K, E) matrix, zero-padded sublane/lane dense.
    w_mat = conv_w.reshape(E, K).T.astype(compute_dtype)
    if (Kp, Ep) != (K, E):
        w_mat = jnp.pad(w_mat, ((0, Kp - K), (0, Ep - E)))

    # Batch-invariant rows, kept in f32: the in-kernel elementwise add runs on
    # the f32 VPU, so this also works on v5e (no bf16 VALU there).
    pos_body = (positions[1:].reshape(N, E).astype(jnp.float32)
                + conv_b.reshape(1, E).astype(jnp.float32))
    cls_row = (cls_token.reshape(1, E).astype(jnp.float32)
               + positions[0].reshape(1, E).astype(jnp.float32))
    if (Nk, Ep) != (N, E):
        pos_body = jnp.pad(pos_body, ((0, Nk - N), (0, Ep - E)))
        cls_row = jnp.pad(cls_row, ((0, 0), (0, Ep - E)))

    c_bytes = jnp.dtype(compute_dtype).itemsize
    o_bytes = jnp.dtype(out_dtype).itemsize

    def vmem_footprint(bb):
        # Default pipelining double-buffers every BlockSpec operand.
        return (2 * bb * Nk * Kp * c_bytes          # patches block
                + 2 * bb * (N + 1) * E * o_bytes    # output block
                + 2 * Kp * Ep * c_bytes             # weight (resident)
                + 2 * Nk * Ep * 4                   # pos rows (resident)
                + 2 * Ep * 4)                       # cls row (resident)

    # --- block_batch: target a tall MXU M (bb*Nk ~ 512), stay inside a
    # v7x-safe VMEM budget (64 MiB physical, keep headroom), divide B, and
    # prefer >= 2 grid steps so the "parallel" axis can shard across v7x's two
    # TensorCores when that doesn't shrink M below ~256.
    vmem_budget = 40 * 1024 * 1024
    if block_batch is None:
        block_batch = max(1, min(B, pl.cdiv(512, Nk)))
        while block_batch > 1 and vmem_footprint(block_batch) > vmem_budget:
            block_batch -= 1
    block_batch = max(1, min(block_batch, B))
    while B % block_batch:
        block_batch -= 1
    if (B // block_batch == 1 and block_batch % 2 == 0
            and (block_batch // 2) * Nk >= 256):
        block_batch //= 2
    grid = (B // block_batch,)

    vmem_limit = int(min(64 * 1024 * 1024,
                         max(16 * 1024 * 1024,
                             vmem_footprint(block_batch) + (4 << 20))))

    cost = pl.CostEstimate(
        flops=2 * B * N * K * E,                    # useful (un-padded) flops
        transcendentals=0,
        bytes_accessed=(B * Nk * Kp * c_bytes       # patches in
                        + Kp * Ep * c_bytes         # weight in
                        + Nk * Ep * 4 + Ep * 4      # pos + cls in
                        + B * (N + 1) * E * o_bytes),  # output
    )

    out = pl.pallas_call(
        patch_embed_kernel,
        out_shape=jax.ShapeDtypeStruct((B, N + 1, E), out_dtype),
        grid_spec=pltpu.PrefetchScalarGridSpec(
            num_scalar_prefetch=0,
            grid=grid,
            in_specs=[
                pl.BlockSpec((block_batch, Nk, Kp), lambda g: (g, 0, 0)),
                # Constant index_maps -> weight / pos / cls stay resident
                # across grid steps.  (pipeline_mode=pl.Buffered(1) would
                # halve their VMEM; left at the default buffering here for
                # maximal lowering compatibility.)
                pl.BlockSpec((Kp, Ep), lambda g: (0, 0)),
                pl.BlockSpec((Nk, Ep), lambda g: (0, 0)),
                pl.BlockSpec((1, Ep), lambda g: (0, 0)),
            ],
            out_specs=pl.BlockSpec((block_batch, N + 1, E),
                                   lambda g: (g, 0, 0)),
        ),
        compiler_params=pltpu.CompilerParams(
            dimension_semantics=("parallel",),
            vmem_limit_bytes=vmem_limit,
        ),
        cost_estimate=cost,
    )(patches, w_mat, pos_body, cls_row)
    return out


def reference(x, conv_w, conv_b, cls_token, positions, patch_size):
    """Pure-JAX (f32) reference mirroring the PyTorch forward."""
    out = lax.conv_general_dilated(
        x, conv_w,
        window_strides=(patch_size, patch_size),
        padding="VALID",
        dimension_numbers=("NCHW", "OIHW", "NCHW"),
    ) + conv_b.reshape(1, -1, 1, 1)
    B, E, Hp, Wp = out.shape
    out = out.reshape(B, E, Hp * Wp).transpose(0, 2, 1)          # (B, N, E)
    cls = jnp.broadcast_to(cls_token.reshape(1, 1, E), (B, 1, E))
    out = jnp.concatenate([cls, out], axis=1)                    # (B, N+1, E)
    out = out + positions.reshape(1, -1, E)
    return out


if __name__ == "__main__":
    # Small shapes consistent with the module:
    # inplanes=4, patch_size=4, emb_size=32, image_size=16, batch=2
    B, C, H, W = 2, 4, 16, 16
    patch_size = 4
    emb_size = 32
    num_patches = (H // patch_size) * (W // patch_size)

    key = jax.random.PRNGKey(0)
    k_x, k_w, k_b, k_cls, k_pos = jax.random.split(key, 5)

    x = jax.random.normal(k_x, (B, C, H, W), dtype=jnp.float32)
    conv_w = jax.random.normal(
        k_w, (emb_size, C, patch_size, patch_size), dtype=jnp.float32) * 0.02
    conv_b = jax.random.normal(k_b, (emb_size,), dtype=jnp.float32) * 0.02
    cls_token = jax.random.normal(k_cls, (1, 1, emb_size), dtype=jnp.float32)
    positions = jax.random.normal(
        k_pos, (num_patches + 1, emb_size), dtype=jnp.float32)

    ref = reference(x, conv_w, conv_b, cls_token, positions, patch_size)

    # Default path: bf16 matmul operands (native MXU on v5e/v6e/v7x), f32
    # accumulation, f32 output -> looser tolerance vs the f32 reference.
    out_bf16 = patch_embedding(x, conv_w, conv_b, cls_token, positions,
                               patch_size)
    out_bf16 = jax.block_until_ready(out_bf16)
    assert out_bf16.shape == (B, num_patches + 1, emb_size), out_bf16.shape
    assert jnp.allclose(out_bf16, ref, atol=2e-2, rtol=2e-2), (
        float(jnp.max(jnp.abs(out_bf16 - ref))))

    # f32 operand path for a tight numerical check of the kernel math.
    out_f32 = patch_embedding(x, conv_w, conv_b, cls_token, positions,
                              patch_size, compute_dtype=jnp.float32)
    out_f32 = jax.block_until_ready(out_f32)
    assert out_f32.shape == (B, num_patches + 1, emb_size), out_f32.shape
    assert jnp.allclose(out_f32, ref, atol=1e-4, rtol=1e-4), (
        float(jnp.max(jnp.abs(out_f32 - ref))))

    print("KERNEL_OK")
</pallas_src>

<mosaic_0001>
module attributes {stable_mosaic.version = 11 : i64} {
  func.func @patch_embed_kernel(%arg0: i32, %arg1: memref<2x16x128xbf16, #tpu.memory_space<vmem>>, %arg2: memref<128x128xbf16, #tpu.memory_space<vmem>>, %arg3: memref<16x128xf32, #tpu.memory_space<vmem>>, %arg4: memref<1x128xf32, #tpu.memory_space<vmem>>, %arg5: memref<2x17x32xf32, #tpu.memory_space<vmem>>) attributes {dimension_semantics = [#tpu.dimension_semantics<parallel>], iteration_bounds = array<i64: 1>, scalar_prefetch = 0 : i64, scratch_operands = 0 : i64, tpu.core_type = #tpu.core_type<tc>, window_params = [{transform_indices = @transform_0, window_bounds = array<i64: 2, 16, 128>}, {pipeline_mode = #tpu.pipeline_mode<synchronous>, transform_indices = @transform_1, window_bounds = array<i64: 128, 128>}, {pipeline_mode = #tpu.pipeline_mode<synchronous>, transform_indices = @transform_2, window_bounds = array<i64: 16, 128>}, {pipeline_mode = #tpu.pipeline_mode<synchronous>, transform_indices = @transform_3, window_bounds = array<i64: 1, 128>}, {transform_indices = @transform_4, window_bounds = array<i64: 2, 17, 32>}]} {
    %c0 = arith.constant 0 : index
    %c0_0 = arith.constant 0 : index
    %c0_1 = arith.constant 0 : index
    %0 = vector.load %arg1[%c0, %c0_0, %c0_1] : memref<2x16x128xbf16, #tpu.memory_space<vmem>>, vector<2x16x128xbf16>
    %1 = vector.shape_cast %0 : vector<2x16x128xbf16> to vector<32x128xbf16>
    %c0_2 = arith.constant 0 : index
    %c0_3 = arith.constant 0 : index
    %2 = vector.load %arg2[%c0_2, %c0_3] : memref<128x128xbf16, #tpu.memory_space<vmem>>, vector<128x128xbf16>
    %cst = arith.constant dense<0.000000e+00> : vector<32x128xf32>
    %3 = tpu.matmul %1, %2, %cst {dimension_numbers = #tpu.dot_dimension_numbers<[1], [0], [0], [1], [0, 0, 1, 1], [], []>} : vector<32x128xbf16>, vector<128x128xbf16>, vector<32x128xf32> -> vector<32x128xf32>
    %4 = vector.shape_cast %3 : vector<32x128xf32> to vector<2x16x128xf32>
    %c0_4 = arith.constant 0 : index
    %c0_5 = arith.constant 0 : index
    %5 = vector.load %arg3[%c0_4, %c0_5] : memref<16x128xf32, #tpu.memory_space<vmem>>, vector<16x128xf32>
    %6 = vector.shape_cast %5 : vector<16x128xf32> to vector<1x16x128xf32>
    %7 = vector.broadcast %6 : vector<1x16x128xf32> to vector<2x16x128xf32>
    %8 = arith.addf %4, %7 : vector<2x16x128xf32>
    %c0_6 = arith.constant 0 : index
    %c0_7 = arith.constant 0 : index
    %9 = vector.load %arg4[%c0_6, %c0_7] : memref<1x128xf32, #tpu.memory_space<vmem>>, vector<1x128xf32>
    %10 = vector.shape_cast %9 : vector<1x128xf32> to vector<1x1x128xf32>
    %11 = vector.shape_cast %10 : vector<1x1x128xf32> to vector<1x1x128xf32>
    %12 = vector.broadcast %11 : vector<1x1x128xf32> to vector<2x1x128xf32>
    %13 = vector.extract_strided_slice %12 {offsets = [0, 0, 0], sizes = [2, 1, 32], strides = [1, 1, 1]} : vector<2x1x128xf32> to vector<2x1x32xf32>
    %c0_8 = arith.constant 0 : index
    %c0_9 = arith.constant 0 : index
    %c0_10 = arith.constant 0 : index
    %14 = vector.load %arg5[%c0_8, %c0_9, %c0_10] : memref<2x17x32xf32, #tpu.memory_space<vmem>>, vector<2x1x32xf32>
    tpu.vector_store %arg5[%c0_8, %c0_9, %c0_10], %13 {strides = array<i32>} : memref<2x17x32xf32, #tpu.memory_space<vmem>>, vector<2x1x32xf32>,
    %15 = vector.extract_strided_slice %8 {offsets = [0, 0, 0], sizes = [2, 16, 32], strides = [1, 1, 1]} : vector<2x16x128xf32> to vector<2x16x32xf32>
    %c0_11 = arith.constant 0 : index
    %c1 = arith.constant 1 : index
    %c0_12 = arith.constant 0 : index
    %16 = vector.load %arg5[%c0_11, %c1, %c0_12] : memref<2x17x32xf32, #tpu.memory_space<vmem>>, vector<2x16x32xf32>
    tpu.vector_store %arg5[%c0_11, %c1, %c0_12], %15 {strides = array<i32>} : memref<2x17x32xf32, #tpu.memory_space<vmem>>, vector<2x16x32xf32>,
    return
  }
  func.func @transform_0(%arg0: i32) -> (i32, i32, i32) {
    %c0_i32 = arith.constant 0 : i32
    %c0_i32_0 = arith.constant 0 : i32
    %c0_i32_1 = arith.constant 0 : i32
    return %arg0, %c0_i32, %c0_i32_0 : i32, i32, i32
  }
  func.func @transform_1(%arg0: i32) -> (i32, i32) {
    %c0_i32 = arith.constant 0 : i32
    %c0_i32_0 = arith.constant 0 : i32
    %c0_i32_1 = arith.constant 0 : i32
    return %c0_i32, %c0_i32_0 : i32, i32
  }
  func.func @transform_2(%arg0: i32) -> (i32, i32) {
    %c0_i32 = arith.constant 0 : i32
    %c0_i32_0 = arith.constant 0 : i32
    %c0_i32_1 = arith.constant 0 : i32
    return %c0_i32, %c0_i32_0 : i32, i32
  }
  func.func @transform_3(%arg0: i32) -> (i32, i32) {
    %c0_i32 = arith.constant 0 : i32
    %c0_i32_0 = arith.constant 0 : i32
    %c0_i32_1 = arith.constant 0 : i32
    return %c0_i32, %c0_i32_0 : i32, i32
  }
  func.func @transform_4(%arg0: i32) -> (i32, i32, i32) {
    %c0_i32 = arith.constant 0 : i32
    %c0_i32_0 = arith.constant 0 : i32
    %c0_i32_1 = arith.constant 0 : i32
    return %arg0, %c0_i32, %c0_i32_0 : i32, i32, i32
  }
}

</mosaic_0001>

<bundles_post_ra>
// kernel: tpu_custom_call.1
= control target key start
LH: loop header
LB: loop body
LE: loop exit
PB: predicated region body
PF: predicated region fallthrough
CT: control target
= control target key end

     0   :  { %9 = vsyncpa [#allocation3], 0  ;;  %s432_s0 = inlined_call_operand.hbm [shape: bf16[2,16,128], index: 0, kind: input, shape index: {}]   ;;  %s433_s1 = inlined_call_operand.hbm [shape: bf16[128,128], index: 1, kind: input, shape index: {}]   ;;  %s434_s2 = inlined_call_operand.hbm [shape: f32[16,128], index: 2, kind: input, shape index: {}]   ;;  %s435_s3 = inlined_call_operand.vmem [shape: f32[1,128], index: 3, kind: input, shape index: {}]   ;;  %s436_s4 = inlined_call_operand.vmem [shape: f32[2,17,32], index: 4, kind: output, shape index: {}]  }
   0x1   :  { %10 = vsyncpa [#allocation5], 0  ;;  %s336_s15 = smov [#allocation4]   ;;  %s337_s17 = smov [#allocation2]  }
   0x2   :  { %s28_s16 = sshll.u32 %s336_s15, 4  ;;  %s16_s18 = sshll.u32 %s337_s17, 4  ;;  %s29_s16 = int_to_ptr.vmem [resolvable:$true] %s28_s16  ;;  %s368_s18 = int_to_ptr.vmem [resolvable:$true] %s16_s18 }
   0x3   :  { %s266_s21 = scalar_lea.hbm %s433_s1, 1024 }
   0x4   :  { %p267_p0 = scmp.ne.s32.totalorder %s433_s1, %s266_s21  ;;  %p270_p1 = scmp.lt.u32.totalorder %s266_s21, %s433_s1 }
   0x6   :  { %p272_p2 = pnand %p270_p1, %p267_p0 }
   0x8   :  { %275 = shalt.err (!%p272_p2)
}
   0x9   :  { %s276_s26 = scalar_lea.vmem %s29_s16, 1024  ;;  %p281_p4 = scmp.lt.s32.totalorder %s29_s16, %s29_s16 }
   0xa   :  { %p277_p3 = scmp.ne.s32.totalorder %s29_s16, %s276_s26  ;;  %p282_p5 = scmp.lt.s32.totalorder %s276_s26, %s276_s26 }
   0xc   :  { %p283_p6 = por %p282_p5, %p281_p4 }
   0xe   :  { %p284_p7 = pnand %p283_p6, %p277_p3 }
  0x10   :  { %287 = shalt.err (!%p284_p7)
}
  0x11   :  { %s338_s27 = smov 64   ;;  %s339_s28 = smov 4  }
  0x12   :  { %34 = dma.hbm_to_vmem [thread:$0]  %s433_s1, 1024, %s29_s16, [#allocation5], %s338_s27, %s338_s27, %s339_s28  }
  0x13   :  { %s288_s7 = scalar_lea.hbm %s432_s0, 256 }
  0x14   :  { %p289_p8 = scmp.ne.s32.totalorder %s432_s0, %s288_s7  ;;  %p292_p9 = scmp.lt.u32.totalorder %s288_s7, %s432_s0 }
  0x16   :  { %p294_p10 = pnand %p292_p9, %p289_p8 }
  0x18   :  { %297 = shalt.err (!%p294_p10)
}
  0x19   :  { %s298_s12 = scalar_lea.vmem %s368_s18, 256  ;;  %p303_p12 = scmp.lt.s32.totalorder %s368_s18, %s368_s18 }
  0x1a   :  { %p299_p11 = scmp.ne.s32.totalorder %s368_s18, %s298_s12  ;;  %p304_p13 = scmp.lt.s32.totalorder %s298_s12, %s298_s12 }
  0x1c   :  { %p305_p0 = por %p304_p13, %p303_p12 }
  0x1e   :  { %p306_p1 = pnand %p305_p0, %p299_p11 }
  0x20   :  { %309 = shalt.err (!%p306_p1)
}
  0x21   :  { %22 = dma.hbm_to_vmem [thread:$0]  %s432_s0, 256, %s368_s18, [#allocation3], %s338_s27, %s338_s27, %s339_s28  }
  0x22   :  { %s340_s14 = smov [#allocation6]   ;;  %s310_s19 = scalar_lea.hbm %s434_s2, 256 }
  0x23   :  { %s40_s15 = sshll.u32 %s340_s14, 4  ;;  %p311_p2 = scmp.ne.s32.totalorder %s434_s2, %s310_s19  ;;  %s41_s15 = int_to_ptr.vmem [resolvable:$true] %s40_s15 }
  0x24   :  { %p314_p3 = scmp.lt.u32.totalorder %s310_s19, %s434_s2 }
  0x26   :  { %p316_p4 = pnand %p314_p3, %p311_p2 }
  0x28   :  { %319 = shalt.err (!%p316_p4)
}
  0x29   :  { %s320_s24 = scalar_lea.vmem %s41_s15, 256  ;;  %p325_p6 = scmp.lt.s32.totalorder %s41_s15, %s41_s15 }
  0x2a   :  { %p321_p5 = scmp.ne.s32.totalorder %s41_s15, %s320_s24  ;;  %p326_p7 = scmp.lt.s32.totalorder %s320_s24, %s320_s24 }
  0x2c   :  { %p327_p8 = por %p326_p7, %p325_p6 }
  0x2e   :  { %p328_p9 = pnand %p327_p8, %p321_p5 }
  0x30   :  { %331 = shalt.err (!%p328_p9)
}
  0x31   :  { %s341_s0 = smov 128   ;;  %s342_s18 = smov 8  }
  0x32   :  { %46 = dma.hbm_to_vmem [thread:$0]  %s434_s2, 256, %s41_s15, [#allocation5], %s341_s0, %s341_s0, %s342_s18  }
  0x33   :  { %332 = dma.done.wait [#allocation3], 256  }
  0x34   :  { %333 = vsyncadd [#allocation3], 4294967040 }
  0x35   :  { %334 = dma.done.wait [#allocation5], 1280  }
  0x36   :  { %335 = vsyncadd [#allocation5], 4294966016  ;;  %vm195_vm0 = vcmask 253952   ;;  %v194_v0 = vld [vmem:[%s435_s3] sm:$0x1]  ;;  %v257_v2 = vld [vmem:[#allocation4 + $0x8] sm:$0xff]  }
  0x37   :  { %196 = vst.msk [vmem:[%s436_s4] sm:$0x1] %vm195_vm0, %v194_v0  ;;  %197 = vst.msk [vmem:[%s436_s4 + $0x18] sm:$0x1] %vm195_vm0, %v194_v0  ;;  %v256_v1 = vld [vmem:[#allocation4] sm:$0xff]   ;;  %v258_v3 = vld [vmem:[#allocation4 + $0x10] sm:$0xff]  }
  0x38   :  { %229 = vmatprep.subr.bf16.mxu0 %v256_v1  ;;  %v259_v4 = vld [vmem:[#allocation4 + $0x18] sm:$0xff]   ;;  %v264_v5 = vld [vmem:[#allocation2] sm:$0xff]   ;;  %v260_v6 = vld [vmem:[#allocation4 + $0x20] sm:$0xff]   ;;  %vm198_vm1 = vcmask 261120  }
  0x39   :  { %230 = vmatpush3.bf16.msra.mxu0 %v256_v1  ;;  %245 = vmatprep.mubr.bf16.mxu0 %v264_v5  ;;  %v261_v7 = vld [vmem:[#allocation4 + $0x28] sm:$0xff]   ;;  %v262_v8 = vld [vmem:[#allocation4 + $0x30] sm:$0xff]   ;;  %v263_v9 = vld [vmem:[#allocation4 + $0x38] sm:$0xff]  }
  0x3a   :  { %231 = vmatprep.subr.bf16.mxu0 %v257_v2  ;;  %v265_v10 = vld [vmem:[#allocation2 + $0x8] sm:$0xff]   ;;  %v188_v11 = vld [vmem:[#allocation6] sm:$0xff]  ;;  %v189_v13 = vld [vmem:[#allocation6 + $0x8] sm:$0xff] }
  0x3d   :  { %232 = vmatpush3.bf16.msra.mxu0 %v257_v2 }
  0x3e   :  { %233 = vmatprep.subr.bf16.mxu0 %v258_v3 }
  0x41   :  { %234 = vmatpush3.bf16.msra.mxu0 %v258_v3 }
  0x42   :  { %235 = vmatprep.subr.bf16.mxu0 %v259_v4 }
  0x45   :  { %236 = vmatpush3.bf16.msra.mxu0 %v259_v4 }
  0x46   :  { %237 = vmatprep.subr.bf16.mxu0 %v260_v6 }
  0x49   :  { %238 = vmatpush3.bf16.msra.mxu0 %v260_v6 }
  0x4a   :  { %239 = vmatprep.subr.bf16.mxu0 %v261_v7 }
  0x4d   :  { %240 = vmatpush3.bf16.msra.mxu0 %v261_v7 }
  0x4e   :  { %241 = vmatprep.subr.bf16.mxu0 %v262_v8 }
  0x51   :  { %242 = vmatpush3.bf16.msra.mxu0 %v262_v8 }
  0x52   :  { %243 = vmatprep.subr.bf16.mxu0 %v263_v9 }
  0x55   :  { %244 = vmatpush3.bf16.msra.mxu0 %v263_v9 }
  0x58   :  { %246 = vmatmul.mubr.bf16.vlgmr.msra.gmra.mrb[0].mxu0 %v265_v10 }
 0x12b   :  { %v247_v12 = vpop.f32.mrb[0].mxu0 }
 0x12c   :  { %v192_v14 = vadd.f32 %v247_v12, %v188_v11  ;;  %v173_v15 = vpop.f32.mrb[1].mxu0 }
 0x12d   :  { %v190_v16 = vadd.f32 %v188_v11, %v173_v15  ;;  %v248_v17 = vpop.f32.mrb[2].mxu0 }
 0x12e   :  { %201 = vst.msk [vmem:[%s436_s4 + $0x19] sm:$0xff] %vm198_vm1, %v192_v14  ;;  %v193_v18 = vadd.f32 %v248_v17, %v189_v13  ;;  %v176_v19 = vpop.f32.mrb[3].mxu0 }
 0x12f   :  { %199 = vst.msk [vmem:[%s436_s4 + $0x1] sm:$0xff] %vm198_vm1, %v190_v16  ;;  %v191_v20 = vadd.f32 %v189_v13, %v176_v19 }
 0x130   :  { %202 = vst.msk [vmem:[%s436_s4 + $0x21] sm:$0xff] %vm198_vm1, %v193_v18 }
 0x131   :  { %200 = vst.msk [vmem:[%s436_s4 + $0x9] sm:$0xff] %vm198_vm1, %v191_v20 }
 0x132   :  { %207 = vsyncpa [#allocation3], 1 }
 0x133   :  { %208 = vsyncpa [#allocation5], 1 }

</bundles_post_ra>
